<compile_context>
chip_gen: v6e
topology: v6e:2x2x1
jax: 0.10.0
libtpu: 0.0.40
codegen_flags: <defaults>
</compile_context>

<pallas_src>
import jax
import jax.numpy as jnp
from jax.experimental import pallas as pl
from jax.experimental.pallas import tpu as pltpu


# ----------------------------------------------------------------------------
# constants / helpers
# ----------------------------------------------------------------------------
_DECAY_LANES = 1152    # lcm(9, 128): 128 repeats of the 9-elem (particle, coord) pattern
_MOTHER_LANES = 384    # lcm(3, 128)
_TILE_R_MAX = 512      # 512 x 1152 x 4B ≈ 2.25 MiB decay block; ~12 MiB total 2x-buffered
_MIN_PALLAS_BATCH = 16384


def _cdiv(a, b):
    return (a + b - 1) // b


def _round_up(x, m):
    return ((x + m - 1) // m) * m


def _affine_params(mn, mx):
    """Fold (x - mn) / (mx - mn) * 2 - 1 into x*scale + bias (tiny, done once)."""
    mn = mn.astype(jnp.float32)
    mx = mx.astype(jnp.float32)
    scale = 2.0 / (mx - mn)
    bias = -mn * scale - 1.0
    return scale, bias


def _lane_tables(mn, mx, lanes):
    """(3, lanes) f32 table [scale; bias; is_pz] for the flat row-major layout.

    Flattened (B, P, 3) repeats the per-(particle, coord) pattern with period
    P*3; `lanes` is a multiple of that period and of 128, so one table covers
    every row of the (R, lanes) view.
    """
    period = mn.shape[1] * mn.shape[2]            # P * 3
    reps = lanes // period
    scale, bias = _affine_params(mn, mx)
    scale_t = jnp.tile(scale.reshape(period), reps)
    bias_t = jnp.tile(bias.reshape(period), reps)
    pz_t = jnp.tile((jnp.arange(period) % 3 == 2).astype(jnp.float32), reps)
    return jnp.stack([scale_t, bias_t, pz_t])     # (3, lanes)


# ----------------------------------------------------------------------------
# Pallas kernel (optional scaled path; decay + mother fused in one call)
# ----------------------------------------------------------------------------
def _scaled_flat_kernel(xd_ref, xm_ref, pd_ref, pm_ref, od_ref, om_ref):
    def one(x_ref, p_ref, o_ref):
        x = x_ref[...].astype(jnp.float32)
        s = p_ref[0:1, :]
        b = p_ref[1:2, :]
        is_pz = p_ref[2:3, :] > 0.5
        # log on every element is free (EUP has huge slack vs the HBM bound);
        # the select keeps px/py untouched, and pz <= -5 yields NaN exactly
        # like the reference.
        xl = jnp.where(is_pz, jnp.log(x + 5.0), x)
        o_ref[...] = (xl * s + b).astype(o_ref.dtype)

    one(xd_ref, pd_ref, od_ref)
    one(xm_ref, pm_ref, om_ref)


def _preprocess_scaled_pallas(xd, xm, mn_d, mx_d, mn_m, mx_m):
    B, Pd, C = xd.shape
    _, Pm, _ = xm.shape
    assert C == 3 and Pd == 3 and Pm == 1
    assert B % 128 == 0

    R = (B * Pd * C) // _DECAY_LANES              # == B // 128 (same for mother)

    # Free (contiguous) reshapes to the lane-dense flat view — no HBM passes.
    xd2 = xd.reshape(R, _DECAY_LANES)
    xm2 = xm.reshape(R, _MOTHER_LANES)

    pd = _lane_tables(mn_d, mx_d, _DECAY_LANES)
    pm = _lane_tables(mn_m, mx_m, _MOTHER_LANES)

    # Row tile: large enough to amortize the ~0.35 us/step overhead, small
    # enough for the default scoped VMEM everywhere; >= 2 tiles whenever
    # possible so ("parallel",) can use both v7x TensorCores.
    if R <= 8:
        tile_r = R
    else:
        tile_r = min(_TILE_R_MAX, _round_up(_cdiv(R, 2), 8))
    grid = (_cdiv(R, tile_r),)

    def data_spec(lanes):
        return pl.BlockSpec((tile_r, lanes), lambda i: (i, 0))

    def par_spec(lanes):
        return pl.BlockSpec((3, lanes), lambda i: (0, 0))

    od2, om2 = pl.pallas_call(
        _scaled_flat_kernel,
        out_shape=(jax.ShapeDtypeStruct((R, _DECAY_LANES), xd.dtype),
                   jax.ShapeDtypeStruct((R, _MOTHER_LANES), xm.dtype)),
        grid=grid,
        in_specs=[data_spec(_DECAY_LANES), data_spec(_MOTHER_LANES),
                  par_spec(_DECAY_LANES), par_spec(_MOTHER_LANES)],
        out_specs=(data_spec(_DECAY_LANES), data_spec(_MOTHER_LANES)),
        # vmem_limit_bytes intentionally left at the default (fits v5e 16 MiB);
        # no pipeline_mode override — double-buffering already hides the DMA.
        compiler_params=pltpu.CompilerParams(
            dimension_semantics=("parallel",)),
    )(xd2, xm2, pd, pm)

    return od2.reshape(B, Pd, C), om2.reshape(B, Pm, C)


# ----------------------------------------------------------------------------
# fused jnp fallback (small / unaligned batches: one XLA elementwise pass)
# ----------------------------------------------------------------------------
def _scaled_jnp_one(x, mn, mx):
    scale, bias = _affine_params(mn, mx)
    x32 = x.astype(jnp.float32)
    is_pz = jnp.arange(x.shape[-1]) == 2
    xl = jnp.where(is_pz, jnp.log(x32 + 5.0), x32)
    return (xl * scale + bias).astype(x.dtype)


def _preprocess_scaled_jnp(xd, xm, mn_d, mx_d, mn_m, mx_m):
    return _scaled_jnp_one(xd, mn_d, mx_d), _scaled_jnp_one(xm, mn_m, mx_m)


# ----------------------------------------------------------------------------
# Module wrapper
# ----------------------------------------------------------------------------
class OnlineThreeBodyDecayMomentaPreprocessor2:
    def __init__(self, estimation_sample=None, min_pallas_batch=_MIN_PALLAS_BATCH):
        self.min_pallas_batch = min_pallas_batch
        self.min_decay_prods = jnp.zeros((1, 3, 3), jnp.float32)
        self.max_decay_prods = jnp.ones((1, 3, 3), jnp.float32)   # avoid /0 in optional path
        self.min_mother = jnp.zeros((1, 1, 3), jnp.float32)
        self.max_mother = jnp.ones((1, 1, 3), jnp.float32)
        if estimation_sample is not None:
            self.estimate(estimation_sample)

    def estimate(self, estimation_sample):
        self.get_limits_from_samples(
            estimation_sample['momenta'], estimation_sample['momenta_mother'])

    def get_limits_from_samples(self, sample, sample_mother):
        def min_func(x):
            x = jnp.min(x, axis=0, keepdims=True)
            return jnp.where(x < 0, x * 1.1, x * 0.9)

        def max_func(x):
            x = jnp.max(x, axis=0, keepdims=True)
            return jnp.where(x < 0, x * 0.9, x * 1.1)

        # reference logs only the pz column before taking min/max
        s = sample.astype(jnp.float32)
        s = s.at[:, :, 2].set(jnp.log(s[:, :, 2] + 5.0))
        self.min_decay_prods = min_func(s)
        self.max_decay_prods = max_func(s)

        sm = sample_mother.astype(jnp.float32)
        sm = sm.at[:, :, 2].set(jnp.log(sm[:, :, 2] + 5.0))
        self.min_mother = min_func(sm)
        self.max_mother = max_func(sm)

    # --- live path: pure pass-through (matches the PyTorch early `return`) ---
    def preprocess(self, sample, sample_mother, apply_scaling=False):
        if not apply_scaling:
            # Dict re-key only: no kernel launch, no HBM traffic.
            return sample, sample_mother
        B = sample.shape[0]
        if B >= self.min_pallas_batch and B % 128 == 0:
            return _preprocess_scaled_pallas(
                sample, sample_mother,
                self.min_decay_prods, self.max_decay_prods,
                self.min_mother, self.max_mother)
        return _preprocess_scaled_jnp(
            sample, sample_mother,
            self.min_decay_prods, self.max_decay_prods,
            self.min_mother, self.max_mother)

    def postprocess(self, sample, sample_mother):
        # Live path of the reference: pass-through.
        # TODO(synk): the inverse un-scaling (exp-5, min/max inverse, nan_to_num)
        # is dead code in the reference module and intentionally not implemented.
        return sample, sample_mother

    # --- forward --------------------------------------------------------------
    def __call__(self, sample: dict, direction=1, on=None):
        assert type(sample) is dict
        if direction == 1:
            mp, mmp = self.preprocess(sample['momenta'], sample['momenta_mother'])
            return {'momenta_pp': mp, 'momenta_mother_pp': mmp}
        elif direction == -1:
            if on is None:
                key_m, key_mm = 'momenta', 'momenta_mother'
                key_u, key_um = 'momenta_upp', 'momenta_mother_upp'
            elif on == 'sampled':
                key_m, key_mm = 'momenta_pp_sampled', None
                key_u, key_um = 'momenta_sampled_upp', None
            elif on == 'reconstructed':
                key_m, key_mm = 'momenta_pp_reconstructed', None
                key_u, key_um = 'momenta_reconstructed_upp', None
            else:
                raise ValueError('Illegal value of on')
            mu, mmu = self.postprocess(
                sample[key_m], sample[key_mm] if key_mm is not None else None)
            result = {key_u: mu}
            if mmu is not None:
                result[key_um] = mmu
            return result
        else:
            raise ValueError('Direction value invalid.')


# ----------------------------------------------------------------------------
# reference (pure JAX, division form) for the optional scaled path
# ----------------------------------------------------------------------------
def _ref_scaled(x, mn, mx):
    x = x.astype(jnp.float32)
    x = x.at[:, :, 2].set(jnp.log(x[:, :, 2] + 5.0))
    return (x - mn) / (mx - mn) * 2.0 - 1.0


# ----------------------------------------------------------------------------
if __name__ == "__main__":
    key = jax.random.PRNGKey(0)
    k1, k2, k3, k4 = jax.random.split(key, 4)

    B = 16
    momenta = jax.random.uniform(k1, (B, 3, 3), jnp.float32, minval=-2.0, maxval=2.0)
    momenta_mother = jax.random.uniform(k2, (B, 1, 3), jnp.float32, minval=-2.0, maxval=2.0)

    module = OnlineThreeBodyDecayMomentaPreprocessor2(
        estimation_sample={'momenta': momenta, 'momenta_mother': momenta_mother},
        min_pallas_batch=128)   # lowered so the Pallas path is exercised below

    # forward (direction=1): identity dict re-key (no kernel), matching PyTorch exactly
    out = module({'momenta': momenta, 'momenta_mother': momenta_mother}, direction=1)
    jax.block_until_ready(out)
    assert out['momenta_pp'].shape == (B, 3, 3)
    assert out['momenta_mother_pp'].shape == (B, 1, 3)
    assert jnp.allclose(out['momenta_pp'], momenta)
    assert jnp.allclose(out['momenta_mother_pp'], momenta_mother)

    # reverse direction: also identity
    out_rev = module({'momenta': momenta, 'momenta_mother': momenta_mother}, direction=-1)
    jax.block_until_ready(out_rev)
    assert jnp.allclose(out_rev['momenta_upp'], momenta)
    assert jnp.allclose(out_rev['momenta_mother_upp'], momenta_mother)

    out_smp = module({'momenta_pp_sampled': momenta}, direction=-1, on='sampled')
    assert jnp.allclose(out_smp['momenta_sampled_upp'], momenta)

    # optional scaled path, small / unaligned batches -> fused jnp (no Pallas launch)
    for Bs, ka, kb in ((16, k1, k2), (300, k3, k4)):
        m = jax.random.uniform(ka, (Bs, 3, 3), jnp.float32, minval=-2.0, maxval=2.0)
        mm = jax.random.uniform(kb, (Bs, 1, 3), jnp.float32, minval=-2.0, maxval=2.0)
        sd, sm = module.preprocess(m, mm, apply_scaling=True)
        jax.block_until_ready((sd, sm))
        assert jnp.allclose(sd, _ref_scaled(m, module.min_decay_prods,
                                            module.max_decay_prods),
                            rtol=1e-5, atol=1e-5)
        assert jnp.allclose(sm, _ref_scaled(mm, module.min_mother, module.max_mother),
                            rtol=1e-5, atol=1e-5)

    # optional scaled path, 128-aligned batches -> single fused Pallas kernel
    # (B=256: single-tile grid; B=2176: multi-tile grid with a ragged last tile)
    for Bp in (256, 2176):
        kp1, kp2 = jax.random.split(jax.random.PRNGKey(Bp))
        m = jax.random.uniform(kp1, (Bp, 3, 3), jnp.float32, minval=-2.0, maxval=2.0)
        mm = jax.random.uniform(kp2, (Bp, 1, 3), jnp.float32, minval=-2.0, maxval=2.0)
        sd, sm = module.preprocess(m, mm, apply_scaling=True)
        jax.block_until_ready((sd, sm))
        assert sd.shape == (Bp, 3, 3) and sd.dtype == m.dtype
        assert sm.shape == (Bp, 1, 3) and sm.dtype == mm.dtype
        assert jnp.allclose(sd, _ref_scaled(m, module.min_decay_prods,
                                            module.max_decay_prods),
                            rtol=1e-5, atol=1e-5)
        assert jnp.allclose(sm, _ref_scaled(mm, module.min_mother, module.max_mother),
                            rtol=1e-5, atol=1e-5)

    print("KERNEL_OK")
</pallas_src>

<mosaic_0001>
module attributes {stable_mosaic.version = 11 : i64} {
  func.func @_scaled_flat_kernel(%arg0: i32, %arg1: memref<2x1152xf32, #tpu.memory_space<vmem>>, %arg2: memref<2x384xf32, #tpu.memory_space<vmem>>, %arg3: memref<3x1152xf32, #tpu.memory_space<vmem>>, %arg4: memref<3x384xf32, #tpu.memory_space<vmem>>, %arg5: memref<2x1152xf32, #tpu.memory_space<vmem>>, %arg6: memref<2x384xf32, #tpu.memory_space<vmem>>) attributes {dimension_semantics = [#tpu.dimension_semantics<parallel>], iteration_bounds = array<i64: 1>, scalar_prefetch = 0 : i64, scratch_operands = 0 : i64, tpu.core_type = #tpu.core_type<tc>, window_params = [{transform_indices = @transform_0, window_bounds = array<i64: 2, 1152>}, {transform_indices = @transform_1, window_bounds = array<i64: 2, 384>}, {pipeline_mode = #tpu.pipeline_mode<synchronous>, transform_indices = @transform_2, window_bounds = array<i64: 3, 1152>}, {pipeline_mode = #tpu.pipeline_mode<synchronous>, transform_indices = @transform_3, window_bounds = array<i64: 3, 384>}, {transform_indices = @transform_4, window_bounds = array<i64: 2, 1152>}, {transform_indices = @transform_5, window_bounds = array<i64: 2, 384>}]} {
    %c0 = arith.constant 0 : index
    %c0_0 = arith.constant 0 : index
    %0 = vector.load %arg1[%c0, %c0_0] : memref<2x1152xf32, #tpu.memory_space<vmem>>, vector<2x1152xf32>
    %c0_1 = arith.constant 0 : index
    %c0_2 = arith.constant 0 : index
    %1 = vector.load %arg3[%c0_1, %c0_2] : memref<3x1152xf32, #tpu.memory_space<vmem>>, vector<1x1152xf32>
    %c1 = arith.constant 1 : index
    %c0_3 = arith.constant 0 : index
    %2 = vector.load %arg3[%c1, %c0_3] : memref<3x1152xf32, #tpu.memory_space<vmem>>, vector<1x1152xf32>
    %c2 = arith.constant 2 : index
    %c0_4 = arith.constant 0 : index
    %3 = vector.load %arg3[%c2, %c0_4] : memref<3x1152xf32, #tpu.memory_space<vmem>>, vector<1x1152xf32>
    %cst = arith.constant 5.000000e-01 : f32
    %4 = vector.broadcast %cst : f32 to vector<1x1152xf32>
    %5 = arith.cmpf ogt, %3, %4 : vector<1x1152xf32>
    %cst_5 = arith.constant 5.000000e+00 : f32
    %6 = vector.broadcast %cst_5 : f32 to vector<2x1152xf32>
    %7 = arith.addf %0, %6 : vector<2x1152xf32>
    %8 = math.log %7 : vector<2x1152xf32>
    %9 = vector.shape_cast %5 : vector<1x1152xi1> to vector<1x1152xi1>
    %10 = vector.broadcast %9 : vector<1x1152xi1> to vector<2x1152xi1>
    %11 = arith.select %10, %8, %0 : vector<2x1152xi1>, vector<2x1152xf32>
    %12 = vector.broadcast %1 : vector<1x1152xf32> to vector<2x1152xf32>
    %13 = arith.mulf %11, %12 : vector<2x1152xf32>
    %14 = vector.broadcast %2 : vector<1x1152xf32> to vector<2x1152xf32>
    %15 = arith.addf %13, %14 : vector<2x1152xf32>
    %c0_6 = arith.constant 0 : index
    %c0_7 = arith.constant 0 : index
    %16 = vector.load %arg5[%c0_6, %c0_7] : memref<2x1152xf32, #tpu.memory_space<vmem>>, vector<2x1152xf32>
    tpu.vector_store %arg5[%c0_6, %c0_7], %15 {strides = array<i32>} : memref<2x1152xf32, #tpu.memory_space<vmem>>, vector<2x1152xf32>,
    %c0_8 = arith.constant 0 : index
    %c0_9 = arith.constant 0 : index
    %17 = vector.load %arg2[%c0_8, %c0_9] : memref<2x384xf32, #tpu.memory_space<vmem>>, vector<2x384xf32>
    %c0_10 = arith.constant 0 : index
    %c0_11 = arith.constant 0 : index
    %18 = vector.load %arg4[%c0_10, %c0_11] : memref<3x384xf32, #tpu.memory_space<vmem>>, vector<1x384xf32>
    %c1_12 = arith.constant 1 : index
    %c0_13 = arith.constant 0 : index
    %19 = vector.load %arg4[%c1_12, %c0_13] : memref<3x384xf32, #tpu.memory_space<vmem>>, vector<1x384xf32>
    %c2_14 = arith.constant 2 : index
    %c0_15 = arith.constant 0 : index
    %20 = vector.load %arg4[%c2_14, %c0_15] : memref<3x384xf32, #tpu.memory_space<vmem>>, vector<1x384xf32>
    %cst_16 = arith.constant 5.000000e-01 : f32
    %21 = vector.broadcast %cst_16 : f32 to vector<1x384xf32>
    %22 = arith.cmpf ogt, %20, %21 : vector<1x384xf32>
    %cst_17 = arith.constant 5.000000e+00 : f32
    %23 = vector.broadcast %cst_17 : f32 to vector<2x384xf32>
    %24 = arith.addf %17, %23 : vector<2x384xf32>
    %25 = math.log %24 : vector<2x384xf32>
    %26 = vector.shape_cast %22 : vector<1x384xi1> to vector<1x384xi1>
    %27 = vector.broadcast %26 : vector<1x384xi1> to vector<2x384xi1>
    %28 = arith.select %27, %25, %17 : vector<2x384xi1>, vector<2x384xf32>
    %29 = vector.broadcast %18 : vector<1x384xf32> to vector<2x384xf32>
    %30 = arith.mulf %28, %29 : vector<2x384xf32>
    %31 = vector.broadcast %19 : vector<1x384xf32> to vector<2x384xf32>
    %32 = arith.addf %30, %31 : vector<2x384xf32>
    %c0_18 = arith.constant 0 : index
    %c0_19 = arith.constant 0 : index
    %33 = vector.load %arg6[%c0_18, %c0_19] : memref<2x384xf32, #tpu.memory_space<vmem>>, vector<2x384xf32>
    tpu.vector_store %arg6[%c0_18, %c0_19], %32 {strides = array<i32>} : memref<2x384xf32, #tpu.memory_space<vmem>>, vector<2x384xf32>,
    return
  }
  func.func @transform_0(%arg0: i32) -> (i32, i32) {
    %c0_i32 = arith.constant 0 : i32
    %c0_i32_0 = arith.constant 0 : i32
    return %arg0, %c0_i32 : i32, i32
  }
  func.func @transform_1(%arg0: i32) -> (i32, i32) {
    %c0_i32 = arith.constant 0 : i32
    %c0_i32_0 = arith.constant 0 : i32
    return %arg0, %c0_i32 : i32, i32
  }
  func.func @transform_2(%arg0: i32) -> (i32, i32) {
    %c0_i32 = arith.constant 0 : i32
    %c0_i32_0 = arith.constant 0 : i32
    %c0_i32_1 = arith.constant 0 : i32
    return %c0_i32, %c0_i32_0 : i32, i32
  }
  func.func @transform_3(%arg0: i32) -> (i32, i32) {
    %c0_i32 = arith.constant 0 : i32
    %c0_i32_0 = arith.constant 0 : i32
    %c0_i32_1 = arith.constant 0 : i32
    return %c0_i32, %c0_i32_0 : i32, i32
  }
  func.func @transform_4(%arg0: i32) -> (i32, i32) {
    %c0_i32 = arith.constant 0 : i32
    %c0_i32_0 = arith.constant 0 : i32
    return %arg0, %c0_i32 : i32, i32
  }
  func.func @transform_5(%arg0: i32) -> (i32, i32) {
    %c0_i32 = arith.constant 0 : i32
    %c0_i32_0 = arith.constant 0 : i32
    return %arg0, %c0_i32 : i32, i32
  }
}

</mosaic_0001>

<bundles_post_ra>
// kernel: tpu_custom_call.1
= control target key start
LH: loop header
LB: loop body
LE: loop exit
PB: predicated region body
PF: predicated region fallthrough
CT: control target
= control target key end

     0   :  { %11 = vsyncpa [#allocation3], 0  ;;  %s1085_s0 = inlined_call_operand.hbm [shape: f32[2,1152], index: 0, kind: input, shape index: {}]   ;;  %s1086_s1 = inlined_call_operand.hbm [shape: f32[2,384], index: 1, kind: input, shape index: {}]   ;;  %s1087_s2 = inlined_call_operand.hbm [shape: f32[3,1152], index: 2, kind: input, shape index: {}]   ;;  %s1088_s3 = inlined_call_operand.hbm [shape: f32[3,384], index: 3, kind: input, shape index: {}]   ;;  %s1089_s4 = inlined_call_operand.hbm [shape: f32[2,1152], index: 4, kind: output, shape index: {0}]   ;;  %s1090_s5 = inlined_call_operand.hbm [shape: f32[2,384], index: 5, kind: output, shape index: {1}]  }
   0x1   :  { %12 = vsyncpa [#allocation6], 0 }
   0x2   :  { %13 = vsyncpa [#allocation9], 0 }
   0x3   :  { %14 = vsyncpa [#allocation4], 0 }
   0x4   :  { %15 = vsyncpa [#allocation12], 0  ;;  %s732_s18 = smov [#allocation5]   ;;  %s733_s20 = smov [#allocation2]  }
   0x5   :  { %s32_s19 = sshll.u32 %s732_s18, 4  ;;  %s22_s21 = sshll.u32 %s733_s20, 4  ;;  %s33_s19 = int_to_ptr.vmem [resolvable:$true] %s32_s19  ;;  %s23_s21 = int_to_ptr.vmem [resolvable:$true] %s22_s21 }
   0x6   :  { %s610_s22 = scalar_lea.vmem %s33_s19, 96  ;;  %p615_p1 = scmp.lt.s32.totalorder %s33_s19, %s33_s19 }
   0x7   :  { %p611_p0 = scmp.ne.s32.totalorder %s33_s19, %s610_s22  ;;  %p616_p2 = scmp.lt.s32.totalorder %s610_s22, %s610_s22 }
   0x9   :  { %p617_p3 = por %p616_p2, %p615_p1 }
   0xb   :  { %p618_p4 = pnand %p617_p3, %p611_p0 }
   0xd   :  { %621 = shalt.err (!%p618_p4)
}
   0xe   :  { %35 = dma.hbm_to_vmem [thread:$0]  %s1086_s1, 96, %s33_s19, [#allocation6]  }
   0xf   :  { %s630_s25 = scalar_lea.vmem %s23_s21, 288  ;;  %p635_p6 = scmp.lt.s32.totalorder %s23_s21, %s23_s21 }
  0x10   :  { %p631_p5 = scmp.ne.s32.totalorder %s23_s21, %s630_s25  ;;  %p636_p7 = scmp.lt.s32.totalorder %s630_s25, %s630_s25 }
  0x12   :  { %p637_p8 = por %p636_p7, %p635_p6 }
  0x14   :  { %p638_p9 = pnand %p637_p8, %p631_p5 }
  0x16   :  { %641 = shalt.err (!%p638_p9)
}
  0x17   :  { %25 = dma.hbm_to_vmem [thread:$0]  %s1085_s0, 288, %s23_s21, [#allocation3]  }
  0x18   :  { %s734_s28 = smov [#allocation7]   ;;  %s735_s30 = smov [#allocation8]  }
  0x19   :  { %s42_s29 = sshll.u32 %s734_s28, 4  ;;  %s52_s6 = sshll.u32 %s735_s30, 4  ;;  %s43_s29 = int_to_ptr.vmem [resolvable:$true] %s42_s29  ;;  %s53_s6 = int_to_ptr.vmem [resolvable:$true] %s52_s6 }
  0x1a   :  { %s650_s7 = scalar_lea.vmem %s43_s29, 576  ;;  %p655_p11 = scmp.lt.s32.totalorder %s43_s29, %s43_s29 }
  0x1b   :  { %p651_p10 = scmp.ne.s32.totalorder %s43_s29, %s650_s7  ;;  %p656_p12 = scmp.lt.s32.totalorder %s650_s7, %s650_s7 }
  0x1d   :  { %p657_p13 = por %p656_p12, %p655_p11 }
  0x1f   :  { %p658_p0 = pnand %p657_p13, %p651_p10 }
  0x21   :  { %661 = shalt.err (!%p658_p0)
}
  0x22   :  { %45 = dma.hbm_to_vmem [thread:$0]  %s1087_s2, 576, %s43_s29, [#allocation6]  }
  0x23   :  { %s670_s9 = scalar_lea.vmem %s53_s6, 192  ;;  %p675_p2 = scmp.lt.s32.totalorder %s53_s6, %s53_s6 }
  0x24   :  { %p671_p1 = scmp.ne.s32.totalorder %s53_s6, %s670_s9  ;;  %p676_p3 = scmp.lt.s32.totalorder %s670_s9, %s670_s9 }
  0x26   :  { %p677_p4 = por %p676_p3, %p675_p2 }
  0x28   :  { %p678_p5 = pnand %p677_p4, %p671_p1 }
  0x2a   :  { %681 = shalt.err (!%p678_p5)
}
  0x2b   :  { %55 = dma.hbm_to_vmem [thread:$0]  %s1088_s3, 192, %s53_s6, [#allocation9]  }
  0x2c   :  { %722 = dma.done.wait [#allocation3], 288  }
  0x2d   :  { %723 = vsyncadd [#allocation3], 4294967008 }
  0x2e   :  { %724 = dma.done.wait [#allocation6], 672  }
  0x2f   :  { %725 = vsyncadd [#allocation6], 4294966624 }
  0x30   :  { %726 = dma.done.wait [#allocation9], 192  }
  0x31   :  { %727 = vsyncadd [#allocation9], 4294967104  ;;  %v95_v0 = vlaneseq  ;;  %v736_v1 = vmov 1983009808   ;;  %v68_v5 = vld [vmem:[#allocation2] sm:$0xff]  ;;  %v737_v11 = vmov 0  }
  0x32   :  { %v145_v2 = vunpack.c.l.s4 %v736_v1  ;;  %v79_v6 = vld [vmem:[#allocation7 + $0x2] ss:$4 sm:$0xff]  ;;  %v84_v7 = vadd.f32 5.0, %v68_v5  ;;  %v196_v9 = vcombine.high %v68_v5, %v68_v5  ;;  %v793_v16 = vld [vmem:[#allocation7] ss:$4 sm:$0xff]  ;;  %s738_s2 = smov [#allocation10]  }
  0x33   :  { %v96_v3 = vshrl.u32 %v95_v0, 7  ;;  %vm82_vm0 = vcmp.gt.f32.partialorder %v79_v6, 0.5  ;;  %v69_v15 = vld [vmem:[#allocation2 + $0x8] sm:$0xff]  ;;  %v835_v38 = vld [vmem:[#allocation2 + $0x10] sm:$0x3]  ;;  %s557_s3 = sshll.u32 %s738_s2, 4  ;;  %s558_s3 = int_to_ptr.vmem [resolvable:$true] %s557_s3 }
  0x34   :  { %v146_v4 = vunpack.c.0.s8 %v145_v2  ;;  %594 = vlog2.f32 %v84_v7  ;;  %v787_v12 = vsel %vm82_vm0, 1, %v737_v11  ;;  %v807_v22 = vld [vmem:[#allocation7 + $0x1] ss:$4 sm:$0xff]  ;;  %v85_v24 = vadd.f32 5.0, %v69_v15  ;;  %s739_s11 = smov [#allocation11]   ;;  %s682_s13 = scalar_lea.vmem %s558_s3, 288 }
  0x35   :  { %v784_v10 = vsub.s32 0, %v96_v3  ;;  %v789_v13 = vsub.s32 1, %v96_v3  ;;  %v791_v14 = vsub.s32 2, %v96_v3  ;;  %v795_v17 = vsub.s32 3, %v96_v3  ;;  %v423_v44 = vld [vmem:[#allocation5] sm:$0x3f]  ;;  %p683_p6 = scmp.ne.s32.totalorder %s558_s3, %s682_s13  ;;  %p687_p7 = scmp.lt.s32.totalorder %s558_s3, %s558_s3 }
  0x36   :  { %v782_v8 = vsub.s32 %v146_v4, %v96_v3  ;;  %v803_v20 = vsub.s32 4, %v96_v3  ;;  %v805_v21 = vsub.s32 5, %v96_v3  ;;  %v811_v25 = vsub.s32 6, %v96_v3  ;;  %v81_v39 = vld [vmem:[#allocation7 + $0x22] ss:$4 sm:$0x1]  ;;  %p688_p8 = scmp.lt.s32.totalorder %s682_s13, %s682_s13 }
  0x37   :  { %v98_v23 = vrot.slane %v787_v12, %v784_v10  ;;  %v813_v26 = vsub.s32 7, %v96_v3  ;;  %v102_v27 = vrot.slane %v787_v12, %v789_v13  ;;  %v106_v28 = vrot.slane %v787_v12, %v791_v14  ;;  %v428_v45 = vld [vmem:[#allocation8 + $0x2] ss:$4 sm:$0x7]  ;;  %s567_s12 = sshll.u32 %s739_s11, 4  ;;  %s568_s12 = int_to_ptr.vmem [resolvable:$true] %s567_s12 }
  0x38   :  { %v798_v18 = vrot.slane %v68_v5, %v782_v8  ;;  %v801_v19 = vrot.slane %v196_v9, %v782_v8  ;;  %v260_v29 = vrot.slane %v793_v16, %v784_v10  ;;  %v264_v30 = vrot.slane %v793_v16, %v789_v13  ;;  %v889_v1 = vld [vmem:[#allocation7 + $0x20] ss:$4 sm:$0x1]  ;;  %v895_v5 = vld [vmem:[#allocation7 + $0x21] ss:$4 sm:$0x1]  ;;  %p689_p9 = por %p688_p8, %p687_p7 }
  0x39   :  { %v268_v31 = vrot.slane %v793_v16, %v791_v14  ;;  %v272_v32 = vrot.slane %v793_v16, %v795_v17  ;;  %596 = vlog2.f32 %v85_v24  ;;  %v213_v33 = vcombine.high %v69_v15, %v69_v15 }
  0x3a   :  { %v110_v34 = vrot.slane %v787_v12, %v795_v17  ;;  %v211_v35 = vcombine.high %v798_v18, %v798_v18  ;;  %v212_v36 = vcombine.high %v801_v19, %v801_v19  ;;  %v316_v37 = vrot.slane %v807_v22, %v784_v10  ;;  %p690_p10 = pnand %p689_p9, %p683_p6 }
  0x3b   :  { %vm837_vm1 = vcmp.eq.s32.totalorder %v98_v23, 1  ;;  %v320_v41 = vrot.slane %v807_v22, %v789_v13  ;;  %v324_v42 = vrot.slane %v807_v22, %v791_v14  ;;  %v846_v43 = vrot.slane %v69_v15, %v782_v8 }
  0x3c   :  { %vm848_vm2 = vcmp.eq.s32.totalorder %v102_v27, 1  ;;  %vm852_vm3 = vcmp.eq.s32.totalorder %v106_v28, 1  ;;  %v328_v48 = vrot.slane %v807_v22, %v795_v17  ;;  %v114_v49 = vrot.slane %v787_v12, %v803_v20 }
  0x3d   :  { %v118_v50 = vrot.slane %v787_v12, %v805_v21  ;;  %v863_v51 = vrot.slane %v213_v33, %v782_v8  ;;  %vm83_vm4 = vcmp.gt.f32.partialorder %v81_v39, 0.5  ;;  %v86_v52 = vadd.f32 5.0, %v835_v38 }
  0x3e   :  { %vm866_vm5 = vcmp.eq.s32.totalorder %v110_v34, 1  ;;  %v122_v54 = vrot.slane %v787_v12, %v811_v25  ;;  %v126_v55 = vrot.slane %v787_v12, %v813_v26  ;;  %vm429_vm6 = vcmp.gt.f32.partialorder %v428_v45, 0.5 }
  0x3f   :  { %v430_v56 = vadd.f32 5.0, %v423_v44  ;;  %v228_v57 = vcombine.high %v846_v43, %v846_v43  ;;  %v276_v58 = vrot.slane %v793_v16, %v803_v20  ;;  %598 = vlog2.f32 %v86_v52 }
  0x40   :  { %v94_v59 = vsel %vm83_vm4, 1, %v737_v11  ;;  %vm879_vm7 = vcmp.eq.s32.totalorder %v114_v49, 1  ;;  %v280_v62 = vrot.slane %v793_v16, %v805_v21  ;;  %v284_v63 = vrot.slane %v793_v16, %v811_v25 }
  0x41   :  { %v595_v60 = vpop.eup %594  ;;  %v288_v0 = vrot.slane %v793_v16, %v813_v26  ;;  %600 = vlog2.f32 %v430_v56  ;;  %v229_v3 = vcombine.high %v863_v51, %v863_v51  ;;  %v332_v4 = vrot.slane %v807_v22, %v803_v20  ;;  %v931_v56 = vld [vmem:[#allocation8] ss:$4 sm:$0x7] }
  0x42   :  { %v88_v2 = vmul.f32 0.6931472, %v595_v60  ;;  %v433_v6 = vsel %vm429_vm6, 1, %v737_v11  ;;  %vm899_vm8 = vcmp.eq.s32.totalorder %v118_v50, 1  ;;  %vm903_vm9 = vcmp.eq.s32.totalorder %v122_v54, 1 }
  0x43   :  { %v336_v12 = vrot.slane %v807_v22, %v805_v21  ;;  %v340_v15 = vrot.slane %v807_v22, %v811_v25  ;;  %v130_v23 = vrot.slane %v94_v59, %v784_v10  ;;  %v470_v24 = vcombine.high %v423_v44, %v423_v44 }
  0x44   :  { %v143_v27 = vcombine.high %v88_v2, %v88_v2  ;;  %v150_v11 = vrot.slane %v88_v2, %v782_v8  ;;  %v344_v28 = vrot.slane %v807_v22, %v813_v26  ;;  %v236_v33 = vrot.slane %v835_v38, %v782_v8 }
  0x45   :  { %vm917_vm10 = vcmp.eq.s32.totalorder %v126_v55, 1  ;;  %v437_v49 = vrot.slane %v433_v6, %v784_v10  ;;  %v441_v50 = vrot.slane %v433_v6, %v789_v13  ;;  %v934_v59 = vrot.slane %v423_v44, %v782_v8 }
  0x46   :  { %v157_v52 = vrot.slane %v143_v27, %v782_v8  ;;  %v158_v54 = vcombine.high %v150_v11, %v150_v11  ;;  %v246_v55 = vsel %vm837_vm1, %v150_v11, %v798_v18  ;;  %v597_v60 = vpop.eup %596  ;;  %vm939_vm11 = vcmp.eq.s32.totalorder %v130_v23, 1 }
  0x47   :  { %v302_v2 = vmul.f32 %v260_v29, %v246_v55  ;;  %v445_v27 = vrot.slane %v433_v6, %v791_v14  ;;  %v945_v39 = vrot.slane %v470_v24, %v782_v8  ;;  %v90_v23 = vmul.f32 0.6931472, %v597_v60  ;;  %v976_v24 = vld [vmem:[#allocation8 + $0x1] ss:$4 sm:$0x7] }
  0x48   :  { %v159_v40 = vcombine.high %v157_v52, %v157_v52  ;;  %v247_v44 = vsel %vm848_vm2, %v158_v54, %v211_v35  ;;  %v248_v29 = vsel %vm852_vm3, %v157_v52, %v801_v19  ;;  %vm964_vm12 = vcmp.eq.s32.totalorder %v437_v49, 1 }
  0x49   :  { %v303_v11 = vmul.f32 %v264_v30, %v247_v44  ;;  %v304_v6 = vmul.f32 %v268_v31, %v248_v29  ;;  %v358_v18 = vadd.f32 %v316_v37, %v302_v2  ;;  %v496_v35 = vrot.slane %v931_v56, %v784_v10 }
  0x4a   :  { %v249_v30 = vsel %vm866_vm5, %v159_v40, %v212_v36  ;;  %v160_v47 = vcombine.high %v90_v23, %v90_v23  ;;  %v167_v31 = vrot.slane %v90_v23, %v782_v8  ;;  %v485_v37 = vcombine.high %v934_v59, %v934_v59 }
  0x4b   :  { %v305_v49 = vmul.f32 %v272_v32, %v249_v30  ;;  %v359_v52 = vadd.f32 %v320_v41, %v303_v11  ;;  %v360_v19 = vadd.f32 %v324_v42, %v304_v6  ;;  %vm989_vm13 = vcmp.eq.s32.totalorder %v441_v50, 1 }
  0x4c   :  { %vm993_vm14 = vcmp.eq.s32.totalorder %v445_v27, 1  ;;  %v500_v54 = vrot.slane %v931_v56, %v789_v13  ;;  %v174_v32 = vrot.slane %v160_v47, %v782_v8  ;;  %v175_v55 = vcombine.high %v167_v31, %v167_v31  ;;  %v599_v50 = vpop.eup %598 }
  0x4d   :  { %v250_v41 = vsel %vm879_vm7, %v167_v31, %v846_v43  ;;  %v504_v42 = vrot.slane %v931_v56, %v791_v14  ;;  %v361_v60 = vadd.f32 %v328_v48, %v305_v49  ;;  %v376_v2 = vcombine.low %v358_v18, %v359_v52 }
  0x4e   :  { %v306_v27 = vmul.f32 %v276_v58, %v250_v41  ;;  %v515_v40 = vrot.slane %v976_v24, %v784_v10  ;;  %v601_v44 = vpop.eup %600  ;;  %v176_v29 = vcombine.high %v174_v32, %v174_v32  ;;  %v251_v61 = vsel %vm899_vm8, %v175_v55, %v228_v57 }
  0x4f   :  { %v252_v17 = vsel %vm903_vm9, %v174_v32, %v863_v51  ;;  %v92_v48 = vmul.f32 0.6931472, %v599_v50  ;;  %v377_v56 = vcombine.low %v360_v19, %v361_v60  ;;  %v384_v23 = vrot.slane %v376_v2, %v782_v8 }
  0x50   :  { %v307_v58 = vmul.f32 %v280_v62, %v251_v61  ;;  %v308_v11 = vmul.f32 %v284_v63, %v252_v17  ;;  %v253_v43 = vsel %vm917_vm10, %v176_v29, %v229_v3  ;;  %v362_v57 = vadd.f32 %v332_v4, %v306_v27 }
  0x51   :  { %v183_v7 = vrot.slane %v92_v48, %v782_v8  ;;  %v432_v9 = vmul.f32 0.6931472, %v601_v44  ;;  %v391_v6 = vrot.slane %v377_v56, %v782_v8  ;;  %v309_v62 = vmul.f32 %v288_v0, %v253_v43 }
  0x52   :  { %v363_v51 = vadd.f32 %v336_v12, %v307_v58  ;;  %v364_v63 = vadd.f32 %v340_v15, %v308_v11  ;;  %v519_v16 = vrot.slane %v976_v24, %v789_v13  ;;  %v1115_v25 = vrot.slane %v889_v1, %v784_v10 }
  0x53   :  { %v254_v20 = vsel %vm939_vm11, %v183_v7, %v236_v33  ;;  %v450_v3 = vcombine.high %v432_v9, %v432_v9  ;;  %v457_v4 = vrot.slane %v432_v9, %v782_v8  ;;  %v392_v0 = vcombine.low %v384_v23, %v391_v6 }
  0x54   :  { %v365_v21 = vadd.f32 %v344_v28, %v309_v62  ;;  %v393_v12 = vcombine.low %v362_v57, %v363_v51  ;;  %v310_v15 = vmul.f32 %v1115_v25, %v254_v20  ;;  %v523_v13 = vrot.slane %v976_v24, %v791_v14 }
  0x55   :  { %v464_v38 = vrot.slane %v450_v3, %v782_v8  ;;  %v465_v34 = vcombine.high %v457_v4, %v457_v4  ;;  %v489_v33 = vsel %vm964_vm12, %v457_v4, %v934_v59  ;;  %420 = vst [vmem:[#allocation10] sm:$0xff] %v392_v0  ;;  %v1116_v26 = vrot.slane %v895_v5, %v784_v10 }
  0x56   :  { %v394_v45 = vcombine.low %v364_v63, %v365_v21  ;;  %v401_v22 = vrot.slane %v393_v12, %v782_v8  ;;  %v508_v1 = vmul.f32 %v496_v35, %v489_v33 }
  0x57   :  { %v366_v28 = vadd.f32 %v1116_v26, %v310_v15  ;;  %v490_v18 = vsel %vm989_vm13, %v465_v34, %v485_v37  ;;  %v491_v46 = vsel %vm993_vm14, %v464_v38, %v945_v39 }
  0x58   :  { %v408_v14 = vrot.slane %v394_v45, %v782_v8  ;;  %v509_v59 = vmul.f32 %v500_v54, %v490_v18  ;;  %v510_v30 = vmul.f32 %v504_v42, %v491_v46  ;;  %v527_v47 = vadd.f32 %v515_v40, %v508_v1 }
  0x59   :  { %582 = vst.sshfl [vmem:[#allocation10 + $0x10] sm:$0x3 pattern:$0x76325410] %v366_v28 }
  0x5a   :  { %v409_v31 = vcombine.low %v401_v22, %v408_v14  ;;  %v528_v24 = vadd.f32 %v519_v16, %v509_v59  ;;  %v529_v10 = vadd.f32 %v523_v13, %v510_v30 }
  0x5c   :  { %421 = vst [vmem:[#allocation10 + $0x8] sm:$0xff] %v409_v31  ;;  %v533_v5 = vcombine.low %v527_v47, %v528_v24  ;;  %v547_v35 = vrot.slane %v529_v10, %v782_v8 }
  0x5d   :  { %693 = shalt.err (!%p690_p10)
}
  0x5e   :  { %560 = dma.vmem_to_hbm [thread:$0]  %s558_s3, 288, %s1089_s4, [#allocation4]   ;;  %v540_v39 = vrot.slane %v533_v5, %v782_v8 }
  0x5f   :  { %s702_s16 = scalar_lea.vmem %s568_s12, 96  ;;  %p707_p12 = scmp.lt.s32.totalorder %s568_s12, %s568_s12 }
  0x60   :  { %v548_v37 = vcombine.low %v540_v39, %v547_v35  ;;  %p703_p11 = scmp.ne.s32.totalorder %s568_s12, %s702_s16  ;;  %p708_p13 = scmp.lt.s32.totalorder %s702_s16, %s702_s16 }
  0x62   :  { %550 = vst [vmem:[#allocation11] sm:$0x3f] %v548_v37  ;;  %p709_p0 = por %p708_p13, %p707_p12 }
  0x64   :  { %p710_p1 = pnand %p709_p0, %p703_p11 }
  0x66   :  { %713 = shalt.err (!%p710_p1)
}
  0x67   :  { %570 = dma.vmem_to_hbm [thread:$0]  %s568_s12, 96, %s1090_s5, [#allocation12]  }
  0x68   :  { %728 = dma.done.wait [#allocation4], 288  }
  0x69   :  { %729 = vsyncadd [#allocation4], 4294967008 }
  0x6a   :  { %730 = dma.done.wait [#allocation12], 96  }
  0x6b   :  { %731 = vsyncadd [#allocation12], 4294967200 }
  0x6c   :  { %577 = vsyncpa [#allocation3], 1 }
  0x6d   :  { %578 = vsyncpa [#allocation6], 1 }
  0x6e   :  { %579 = vsyncpa [#allocation9], 1 }
  0x6f   :  { %580 = vsyncpa [#allocation4], 1 }
  0x70   :  { %581 = vsyncpa [#allocation12], 1 }

</bundles_post_ra>
